<compile_context>
chip_gen: v7x
topology: tpu7x:2x2x1
jax: 0.10.0
libtpu: 0.0.40
codegen_flags: <defaults>
</compile_context>

<pallas_src>
import functools

import jax
import jax.numpy as jnp
from jax import lax
from jax.experimental import pallas as pl
from jax.experimental.pallas import tpu as pltpu

_LANE = 128  # out_dim padded to a multiple of this once, so output stores are lane-dense


def _cdiv(a, b):
    return (a + b - 1) // b


def _round_up(v, m):
    return ((v + m - 1) // m) * m


def _generation_config():
    """(vmem_capacity_bytes, has_two_tensorcores, tm_cap, tk_cap) for this chip."""
    try:
        vmem_cap = int(pltpu.get_tpu_info().vmem_capacity_bytes)
    except Exception:
        vmem_cap = 64 * 1024 * 1024           # conservative fallback: fits every gen
    # v7x: 64 MiB VMEM per TensorCore, 2 TCs/chip.  v5e/v6e: 128 MiB, 1 TC.
    two_cores = vmem_cap <= 96 * 1024 * 1024
    tm_cap = 256 if two_cores else 512        # 128 MiB chips afford bigger row tiles
    tk_cap = 512 if two_cores else 1024
    return vmem_cap, two_cores, tm_cap, tk_cap


def _choose_tm(M, tm_cap, sublane, two_cores):
    """Row tile: as big as possible (MXU rows / weight reuse); only split a
    single-step batch when there are two TensorCores to feed (v7x megacore)."""
    tm = min(tm_cap, _round_up(M, sublane))
    if M > tm:
        return tm                               # already multiple m steps
    if two_cores and M >= 2 * sublane:
        return _round_up(_cdiv(M, 2), sublane)  # give both v7x cores work
    return tm


def _fc_block_kernel(x_ref, wt_ref, b_ref, g_ref, beta_ref, o_ref, *scratch,
                     eps, neg_slope, valid_n):
    # x_ref:    (tm, tk)      VMEM, native dtype
    # wt_ref:   (tk, n_pad)   VMEM, W^T slab for this K step (native / bf16 dtype)
    # b/g/beta: (1, n_pad)    grid-invariant params
    # o_ref:    (tm, n_pad)   output tile, resident across the K axis
    # scratch:  optional (tm, n_pad) f32 accumulator (only when o_ref is not f32)
    acc_ref = scratch[0] if scratch else o_ref
    k = pl.program_id(1)

    x_val = x_ref[...]
    if x_val.dtype != wt_ref.dtype:             # static; e.g. f32 x with bf16 weights
        x_val = x_val.astype(wt_ref.dtype)
    contrib = jnp.dot(x_val, wt_ref[...], preferred_element_type=jnp.float32)

    @pl.when(k == 0)
    def _first():                               # first-step assign: no zero-fill pass
        acc_ref[...] = contrib

    @pl.when(k > 0)
    def _accumulate():
        acc_ref[...] += contrib

    @pl.when(k == pl.num_programs(1) - 1)
    def _epilogue():
        y = acc_ref[...] + b_ref[...].astype(jnp.float32)
        # LeakyReLU (negative_slope = 0.01, PyTorch default).
        y = jnp.where(y > 0, y, neg_slope * y)

        n_pad = y.shape[-1]
        if valid_n == n_pad:
            mean = jnp.mean(y, axis=-1, keepdims=True)
            centered = y - mean
            var = jnp.mean(centered * centered, axis=-1, keepdims=True)
        else:
            # Padded lanes are exactly 0 (zero-padded W columns & bias, LeakyReLU(0)=0),
            # so a plain sum gives the valid-lane statistics; only `centered` needs a
            # mask, built from a (1, n_pad) iota that broadcasts in the select.
            inv_n = 1.0 / float(valid_n)
            mean = jnp.sum(y, axis=-1, keepdims=True) * inv_n
            lane = lax.broadcasted_iota(jnp.int32, (1, n_pad), 1)
            centered = jnp.where(lane < valid_n, y - mean, 0.0)
            var = jnp.sum(centered * centered, axis=-1, keepdims=True) * inv_n

        out = (centered * lax.rsqrt(var + eps) * g_ref[...].astype(jnp.float32)
               + beta_ref[...].astype(jnp.float32))
        o_ref[...] = out.astype(o_ref.dtype)


def prepare_fc_block_params(w, b, gamma, beta, *, weight_dtype=None, max_tk=None):
    """One-time parameter prep (outside the per-step hot path):
      * transpose the PyTorch (out_dim, in_dim) weight -> W^T (in_dim, out_dim)
      * pad out_dim to a multiple of 128 (lane-dense output stores)
      * choose a VMEM-budget-aware K tile and pad in_dim minimally to it
      * optionally cast the weight to bf16 (MXU-native path, f32 accumulation)
    Returns (wt, bias_2d, gamma_2d, beta_2d, out_dim, tk, tm_cap)."""
    out_dim, in_dim = w.shape
    n_pad = _round_up(out_dim, _LANE)

    vmem_cap, _, tm_cap, tk_cap = _generation_config()
    budget = int(vmem_cap * 0.8)               # leave headroom for compiler scratch
    w_itemsize = (jnp.dtype(weight_dtype).itemsize if weight_dtype is not None
                  else jnp.dtype(w.dtype).itemsize)
    params_bytes = 3 * 2 * n_pad * 4           # bias/gamma/beta double-buffers (tiny)

    # Footprint model (x assumed f32 = worst case):
    #   K-invariant: output double-buffer (+ f32 acc when out is bf16) <= 8 B/elem,
    #   per-K:       W^T double-buffer + x double-buffer.
    def fits(tm_c, tk_c):
        fixed = 8 * tm_c * n_pad + params_bytes
        per_k = tk_c * (2 * n_pad * w_itemsize + 2 * tm_c * 4)
        return fixed + per_k <= budget

    while tm_cap > 64 and not fits(tm_cap, 128):   # very wide layers: shrink rows first
        tm_cap //= 2
    while tk_cap > 128 and not fits(tm_cap, tk_cap):
        tk_cap -= 128
    if max_tk is not None:                          # test/override hook
        tk_cap = max(128, min(tk_cap, _round_up(max_tk, 128)))

    if in_dim <= tk_cap:
        tk = k_pad = in_dim                         # single K step, no K padding at all
    else:
        num_k = _cdiv(in_dim, tk_cap)
        tk = _round_up(_cdiv(in_dim, num_k), 128)   # minimal lane-aligned padding
        k_pad = tk * num_k

    wt = jnp.transpose(w)                           # (in_dim, out_dim), done once
    if (k_pad, n_pad) != (in_dim, out_dim):
        wt = jnp.pad(wt, ((0, k_pad - in_dim), (0, n_pad - out_dim)))
        b = jnp.pad(b, (0, n_pad - out_dim))
        gamma = jnp.pad(gamma, (0, n_pad - out_dim))
        beta = jnp.pad(beta, (0, n_pad - out_dim))
    if weight_dtype is not None:
        wt = wt.astype(weight_dtype)                # bf16 weights; dot accumulates f32

    return (wt, b.reshape(1, n_pad), gamma.reshape(1, n_pad),
            beta.reshape(1, n_pad), out_dim, tk, tm_cap)


def fc_block(x, wt, b2, g2, beta2, out_dim, tk, tm_cap, *, eps=1e-5, neg_slope=0.01):
    """x: (M, in_dim); remaining args from prepare_fc_block_params()."""
    M, in_dim = x.shape
    k_pad, n_pad = wt.shape
    num_k = k_pad // tk

    # K raggedness only: pad x by <128 columns when in_dim % tk != 0.
    # (NOTE: this is one extra HBM read+write of the activations per call; it vanishes
    #  for in_dim that is a multiple of 128 or <= tk_cap.)
    if in_dim != k_pad:
        x = jnp.pad(x, ((0, 0), (0, k_pad - in_dim)))

    vmem_cap, two_cores, _, _ = _generation_config()
    sublane = max(8, 32 // jnp.dtype(x.dtype).itemsize)   # 8 for f32, 16 for bf16
    tm = _choose_tm(M, tm_cap, sublane, two_cores)
    num_m = _cdiv(M, tm)       # ragged last block: garbage rows are row-local & masked

    out_dtype = x.dtype
    acc_in_out = out_dtype == jnp.float32      # f32 output doubles as the accumulator
    scratch_shapes = [] if acc_in_out else [pltpu.VMEM((tm, n_pad), jnp.float32)]

    kernel = functools.partial(_fc_block_kernel, eps=eps, neg_slope=neg_slope,
                               valid_n=out_dim)

    # VMEM budget from the actual tile footprint, clamped to this generation's capacity.
    est = (2 * tm * tk * jnp.dtype(x.dtype).itemsize          # x double-buffer
           + 2 * tk * n_pad * jnp.dtype(wt.dtype).itemsize    # W^T double-buffer
           + 3 * 2 * n_pad * jnp.dtype(b2.dtype).itemsize     # bias/gamma/beta
           + 2 * tm * n_pad * jnp.dtype(out_dtype).itemsize   # output double-buffer
           + (0 if acc_in_out else tm * n_pad * 4))           # f32 accumulator
    vmem_limit = int(min(vmem_cap * 0.9, max(est * 1.25 + (2 << 20), 32 << 20)))

    out = pl.pallas_call(
        kernel,
        out_shape=jax.ShapeDtypeStruct((M, n_pad), out_dtype),
        grid_spec=pltpu.PrefetchScalarGridSpec(
            num_scalar_prefetch=0,
            grid=(num_m, num_k),
            in_specs=[
                pl.BlockSpec((tm, tk), lambda i, k: (i, k)),       # x row/K tile
                pl.BlockSpec((tk, n_pad), lambda i, k: (k, 0)),    # W^T K slab
                pl.BlockSpec((1, n_pad), lambda i, k: (0, 0)),     # bias
                pl.BlockSpec((1, n_pad), lambda i, k: (0, 0)),     # gamma
                pl.BlockSpec((1, n_pad), lambda i, k: (0, 0)),     # beta
            ],
            out_specs=pl.BlockSpec((tm, n_pad), lambda i, k: (i, 0)),
            scratch_shapes=scratch_shapes,
        ),
        compiler_params=pltpu.CompilerParams(
            dimension_semantics=("parallel", "arbitrary"),
            vmem_limit_bytes=vmem_limit,
        ),
    )(x, wt, b2, g2, beta2)

    return out[:, :out_dim] if n_pad != out_dim else out


def _reference(x, w, b, gamma, beta, eps=1e-5, neg_slope=0.01):
    y = x.astype(jnp.float32) @ w.astype(jnp.float32).T + b.astype(jnp.float32)
    y = jnp.where(y > 0, y, neg_slope * y)
    mean = jnp.mean(y, axis=-1, keepdims=True)
    var = jnp.mean((y - mean) ** 2, axis=-1, keepdims=True)
    return (y - mean) / jnp.sqrt(var + eps) * gamma + beta


if __name__ == "__main__":
    key = jax.random.PRNGKey(0)

    def run_case(k, batch, in_dim, out_dim, *, dtype=jnp.float32, weight_dtype=None,
                 max_tk=None, atol=2e-5, rtol=2e-5):
        kx, kw, kb, kg, kbeta = jax.random.split(k, 5)
        bound = 1.0 / float(in_dim) ** 0.5
        x = jax.random.normal(kx, (batch, in_dim), dtype=jnp.float32)
        w = jax.random.uniform(kw, (out_dim, in_dim), minval=-bound, maxval=bound,
                               dtype=jnp.float32)
        b = jax.random.uniform(kb, (out_dim,), minval=-bound, maxval=bound,
                               dtype=jnp.float32)
        gamma = 1.0 + 0.1 * jax.random.normal(kg, (out_dim,), dtype=jnp.float32)
        beta = 0.1 * jax.random.normal(kbeta, (out_dim,), dtype=jnp.float32)

        x_in = x.astype(dtype)
        params = prepare_fc_block_params(w, b, gamma, beta,
                                         weight_dtype=weight_dtype, max_tk=max_tk)
        out = fc_block(x_in, *params)
        jax.block_until_ready(out)

        w_ref = w if weight_dtype is None else w.astype(weight_dtype).astype(jnp.float32)
        ref = _reference(x_in.astype(jnp.float32), w_ref, b, gamma, beta)

        assert out.shape == (batch, out_dim)
        assert out.dtype == jnp.dtype(dtype)
        assert jnp.allclose(out.astype(jnp.float32), ref, atol=atol, rtol=rtol), \
            "mismatch vs reference"

    k1, k2, k3, k4 = jax.random.split(key, 4)
    run_case(k1, batch=8, in_dim=32, out_dim=128)                         # aligned
    run_case(k2, batch=10, in_dim=48, out_dim=96)                         # lane + ragged M
    run_case(k3, batch=12, in_dim=320, out_dim=128, max_tk=128)           # K-tiled accum
    run_case(k4, batch=16, in_dim=64, out_dim=128, dtype=jnp.bfloat16,    # bf16 MXU path
             weight_dtype=jnp.bfloat16, atol=2e-2, rtol=2e-2)

    print("KERNEL_OK")
</pallas_src>

<mosaic_0001>
module attributes {stable_mosaic.version = 11 : i64} {
  func.func @_fc_block_kernel(%arg0: i32, %arg1: i32, %arg2: memref<8x32xf32, #tpu.memory_space<vmem>>, %arg3: memref<32x128xf32, #tpu.memory_space<vmem>>, %arg4: memref<1x128xf32, #tpu.memory_space<vmem>>, %arg5: memref<1x128xf32, #tpu.memory_space<vmem>>, %arg6: memref<1x128xf32, #tpu.memory_space<vmem>>, %arg7: memref<8x128xf32, #tpu.memory_space<vmem>>) attributes {dimension_semantics = [#tpu.dimension_semantics<parallel>, #tpu.dimension_semantics<arbitrary>], iteration_bounds = array<i64: 1, 1>, scalar_prefetch = 0 : i64, scratch_operands = 0 : i64, tpu.core_type = #tpu.core_type<tc>, window_params = [{transform_indices = @transform_0, window_bounds = array<i64: 8, 32>}, {transform_indices = @transform_1, window_bounds = array<i64: 32, 128>}, {pipeline_mode = #tpu.pipeline_mode<synchronous>, transform_indices = @transform_2, window_bounds = array<i64: 1, 128>}, {pipeline_mode = #tpu.pipeline_mode<synchronous>, transform_indices = @transform_3, window_bounds = array<i64: 1, 128>}, {pipeline_mode = #tpu.pipeline_mode<synchronous>, transform_indices = @transform_4, window_bounds = array<i64: 1, 128>}, {transform_indices = @transform_5, window_bounds = array<i64: 8, 128>}]} {
    %c0 = arith.constant 0 : index
    %c0_0 = arith.constant 0 : index
    %0 = vector.load %arg2[%c0, %c0_0] : memref<8x32xf32, #tpu.memory_space<vmem>>, vector<8x32xf32>
    %c0_1 = arith.constant 0 : index
    %c0_2 = arith.constant 0 : index
    %1 = vector.load %arg3[%c0_1, %c0_2] : memref<32x128xf32, #tpu.memory_space<vmem>>, vector<32x128xf32>
    %cst = arith.constant dense<0.000000e+00> : vector<8x128xf32>
    %2 = tpu.matmul %0, %1, %cst {dimension_numbers = #tpu.dot_dimension_numbers<[1], [0], [0], [1], [0, 0, 1, 1], [], []>} : vector<8x32xf32>, vector<32x128xf32>, vector<8x128xf32> -> vector<8x128xf32>
    %c0_i32 = arith.constant 0 : i32
    %3 = arith.cmpi eq, %arg1, %c0_i32 : i32
    %4 = arith.extui %3 : i1 to i32
    %c0_i32_3 = arith.constant 0 : i32
    %5 = arith.cmpi ne, %4, %c0_i32_3 : i32
    scf.if %5 {
      %c0_8 = arith.constant 0 : index
      %c0_9 = arith.constant 0 : index
      %12 = vector.load %arg7[%c0_8, %c0_9] : memref<8x128xf32, #tpu.memory_space<vmem>>, vector<8x128xf32>
      tpu.vector_store %arg7[%c0_8, %c0_9], %2 {strides = array<i32>} : memref<8x128xf32, #tpu.memory_space<vmem>>, vector<8x128xf32>,
    } else {
    }
    %c0_i32_4 = arith.constant 0 : i32
    %6 = arith.cmpi sgt, %arg1, %c0_i32_4 : i32
    %7 = arith.extui %6 : i1 to i32
    %c0_i32_5 = arith.constant 0 : i32
    %8 = arith.cmpi ne, %7, %c0_i32_5 : i32
    scf.if %8 {
      %c0_8 = arith.constant 0 : index
      %c0_9 = arith.constant 0 : index
      %12 = vector.load %arg7[%c0_8, %c0_9] : memref<8x128xf32, #tpu.memory_space<vmem>>, vector<8x128xf32>
      %13 = arith.addf %12, %2 : vector<8x128xf32>
      %c0_10 = arith.constant 0 : index
      %c0_11 = arith.constant 0 : index
      %14 = vector.load %arg7[%c0_10, %c0_11] : memref<8x128xf32, #tpu.memory_space<vmem>>, vector<8x128xf32>
      tpu.vector_store %arg7[%c0_10, %c0_11], %13 {strides = array<i32>} : memref<8x128xf32, #tpu.memory_space<vmem>>, vector<8x128xf32>,
    } else {
    }
    %c0_i32_6 = arith.constant 0 : i32
    %9 = arith.cmpi eq, %arg1, %c0_i32_6 : i32
    %10 = arith.extui %9 : i1 to i32
    %c0_i32_7 = arith.constant 0 : i32
    %11 = arith.cmpi ne, %10, %c0_i32_7 : i32
    scf.if %11 {
      %c0_8 = arith.constant 0 : index
      %c0_9 = arith.constant 0 : index
      %12 = vector.load %arg7[%c0_8, %c0_9] : memref<8x128xf32, #tpu.memory_space<vmem>>, vector<8x128xf32>
      %c0_10 = arith.constant 0 : index
      %c0_11 = arith.constant 0 : index
      %13 = vector.load %arg4[%c0_10, %c0_11] : memref<1x128xf32, #tpu.memory_space<vmem>>, vector<1x128xf32>
      %14 = vector.broadcast %13 : vector<1x128xf32> to vector<8x128xf32>
      %15 = arith.addf %12, %14 : vector<8x128xf32>
      %cst_12 = arith.constant 0.000000e+00 : f32
      %16 = vector.broadcast %cst_12 : f32 to vector<8x128xf32>
      %17 = arith.cmpf ogt, %15, %16 : vector<8x128xf32>
      %cst_13 = arith.constant 0.00999999977 : f32
      %18 = vector.broadcast %cst_13 : f32 to vector<8x128xf32>
      %19 = arith.mulf %18, %15 : vector<8x128xf32>
      %20 = arith.select %17, %15, %19 : vector<8x128xi1>, vector<8x128xf32>
      %cst_14 = arith.constant dense<0.000000e+00> : vector<8xf32>
      %21 = vector.multi_reduction <add>, %20, %cst_14 [1] : vector<8x128xf32> to vector<8xf32>
      %22 = vector.shape_cast %21 : vector<8xf32> to vector<8x1xf32>
      %cst_15 = arith.constant 1.280000e+02 : f32
      %23 = vector.broadcast %cst_15 : f32 to vector<8x1xf32>
      %24 = arith.divf %22, %23 : vector<8x1xf32>
      %25 = vector.broadcast %24 : vector<8x1xf32> to vector<8x128xf32>
      %26 = arith.subf %20, %25 : vector<8x128xf32>
      %27 = arith.mulf %26, %26 : vector<8x128xf32>
      %cst_16 = arith.constant dense<0.000000e+00> : vector<8xf32>
      %28 = vector.multi_reduction <add>, %27, %cst_16 [1] : vector<8x128xf32> to vector<8xf32>
      %29 = vector.shape_cast %28 : vector<8xf32> to vector<8x1xf32>
      %cst_17 = arith.constant 1.280000e+02 : f32
      %30 = vector.broadcast %cst_17 : f32 to vector<8x1xf32>
      %31 = arith.divf %29, %30 : vector<8x1xf32>
      %cst_18 = arith.constant 9.99999974E-6 : f32
      %32 = vector.broadcast %cst_18 : f32 to vector<8x1xf32>
      %33 = arith.addf %31, %32 : vector<8x1xf32>
      %34 = math.rsqrt %33 : vector<8x1xf32>
      %35 = vector.broadcast %34 : vector<8x1xf32> to vector<8x128xf32>
      %36 = arith.mulf %26, %35 : vector<8x128xf32>
      %c0_19 = arith.constant 0 : index
      %c0_20 = arith.constant 0 : index
      %37 = vector.load %arg5[%c0_19, %c0_20] : memref<1x128xf32, #tpu.memory_space<vmem>>, vector<1x128xf32>
      %38 = vector.broadcast %37 : vector<1x128xf32> to vector<8x128xf32>
      %39 = arith.mulf %36, %38 : vector<8x128xf32>
      %c0_21 = arith.constant 0 : index
      %c0_22 = arith.constant 0 : index
      %40 = vector.load %arg6[%c0_21, %c0_22] : memref<1x128xf32, #tpu.memory_space<vmem>>, vector<1x128xf32>
      %41 = vector.broadcast %40 : vector<1x128xf32> to vector<8x128xf32>
      %42 = arith.addf %39, %41 : vector<8x128xf32>
      %c0_23 = arith.constant 0 : index
      %c0_24 = arith.constant 0 : index
      %43 = vector.load %arg7[%c0_23, %c0_24] : memref<8x128xf32, #tpu.memory_space<vmem>>, vector<8x128xf32>
      tpu.vector_store %arg7[%c0_23, %c0_24], %42 {strides = array<i32>} : memref<8x128xf32, #tpu.memory_space<vmem>>, vector<8x128xf32>,
    } else {
    }
    return
  }
  func.func @transform_0(%arg0: i32, %arg1: i32) -> (i32, i32) {
    %c0_i32 = arith.constant 0 : i32
    return %arg0, %arg1 : i32, i32
  }
  func.func @transform_1(%arg0: i32, %arg1: i32) -> (i32, i32) {
    %c0_i32 = arith.constant 0 : i32
    %c0_i32_0 = arith.constant 0 : i32
    return %arg1, %c0_i32 : i32, i32
  }
  func.func @transform_2(%arg0: i32, %arg1: i32) -> (i32, i32) {
    %c0_i32 = arith.constant 0 : i32
    %c0_i32_0 = arith.constant 0 : i32
    %c0_i32_1 = arith.constant 0 : i32
    return %c0_i32, %c0_i32_0 : i32, i32
  }
  func.func @transform_3(%arg0: i32, %arg1: i32) -> (i32, i32) {
    %c0_i32 = arith.constant 0 : i32
    %c0_i32_0 = arith.constant 0 : i32
    %c0_i32_1 = arith.constant 0 : i32
    return %c0_i32, %c0_i32_0 : i32, i32
  }
  func.func @transform_4(%arg0: i32, %arg1: i32) -> (i32, i32) {
    %c0_i32 = arith.constant 0 : i32
    %c0_i32_0 = arith.constant 0 : i32
    %c0_i32_1 = arith.constant 0 : i32
    return %c0_i32, %c0_i32_0 : i32, i32
  }
  func.func @transform_5(%arg0: i32, %arg1: i32) -> (i32, i32) {
    %c0_i32 = arith.constant 0 : i32
    %c0_i32_0 = arith.constant 0 : i32
    return %arg0, %c0_i32 : i32, i32
  }
}

</mosaic_0001>

<bundles_post_ra>
// kernel: tpu_custom_call.1
= control target key start
LH: loop header
LB: loop body
LE: loop exit
PB: predicated region body
PF: predicated region fallthrough
CT: control target
= control target key end

     0   :  { %10 = vsyncpa [#allocation3], 0  ;;  %s396_s0 = inlined_call_operand.hbm [shape: f32[8,32], index: 0, kind: input, shape index: {}]   ;;  %s397_s1 = inlined_call_operand.hbm [shape: f32[32,128], index: 1, kind: input, shape index: {}]   ;;  %s398_s2 = inlined_call_operand.vmem [shape: f32[1,128], index: 2, kind: input, shape index: {}]   ;;  %s399_s3 = inlined_call_operand.vmem [shape: f32[1,128], index: 3, kind: input, shape index: {}]   ;;  %s400_s4 = inlined_call_operand.vmem [shape: f32[1,128], index: 4, kind: input, shape index: {}]   ;;  %s401_s5 = inlined_call_operand.hbm [shape: f32[8,128], index: 5, kind: output, shape index: {}]  }
   0x1   :  { %11 = vsyncpa [#allocation6], 0 }
   0x2   :  { %12 = vsyncpa [#allocation4], 0  ;;  %s306_s18 = smov [#allocation2]   ;;  %s307_s20 = smov [#allocation5]  }
   0x3   :  { %s19_s19 = sshll.u32 %s306_s18, 4  ;;  %s28_s21 = sshll.u32 %s307_s20, 4  ;;  %s20_s19 = int_to_ptr.vmem [resolvable:$true] %s19_s19  ;;  %s344_s21 = int_to_ptr.vmem [resolvable:$true] %s28_s21 }
   0x4   :  { %s234_s24 = scalar_lea.hbm %s396_s0, 128 }
   0x5   :  { %p235_p0 = scmp.ne.s32.totalorder %s396_s0, %s234_s24  ;;  %p238_p1 = scmp.lt.u32.totalorder %s234_s24, %s396_s0 }
   0x7   :  { %p240_p2 = pnand %p238_p1, %p235_p0 }
   0x9   :  { %243 = shalt.err (!%p240_p2)
}
   0xa   :  { %s244_s29 = scalar_lea.vmem %s20_s19, 128  ;;  %p249_p4 = scmp.lt.s32.totalorder %s20_s19, %s20_s19 }
   0xb   :  { %p245_p3 = scmp.ne.s32.totalorder %s20_s19, %s244_s29  ;;  %p250_p5 = scmp.lt.s32.totalorder %s244_s29, %s244_s29 }
   0xd   :  { %p251_p6 = por %p250_p5, %p249_p4 }
   0xf   :  { %p252_p7 = pnand %p251_p6, %p245_p3 }
  0x11   :  { %255 = shalt.err (!%p252_p7)
}
  0x12   :  { %22 = dma.hbm_to_vmem [thread:$0]  %s396_s0, 128, %s20_s19, [#allocation3]  }
  0x13   :  { %s256_s9 = scalar_lea.hbm %s397_s1, 512 }
  0x14   :  { %p257_p8 = scmp.ne.s32.totalorder %s397_s1, %s256_s9  ;;  %p260_p9 = scmp.lt.u32.totalorder %s256_s9, %s397_s1 }
  0x16   :  { %p262_p10 = pnand %p260_p9, %p257_p8 }
  0x18   :  { %265 = shalt.err (!%p262_p10)
}
  0x19   :  { %s266_s14 = scalar_lea.vmem %s344_s21, 512  ;;  %p271_p12 = scmp.lt.s32.totalorder %s344_s21, %s344_s21 }
  0x1a   :  { %p267_p11 = scmp.ne.s32.totalorder %s344_s21, %s266_s14  ;;  %p272_p13 = scmp.lt.s32.totalorder %s266_s14, %s266_s14 }
  0x1c   :  { %p273_p0 = por %p272_p13, %p271_p12 }
  0x1e   :  { %p274_p1 = pnand %p273_p0, %p267_p11 }
  0x20   :  { %277 = shalt.err (!%p274_p1)
}
  0x21   :  { %s308_s0 = smov 128   ;;  %s309_s15 = smov 8  }
  0x22   :  { %34 = dma.hbm_to_vmem [thread:$0]  %s397_s1, 512, %s344_s21, [#allocation6], %s308_s0, %s308_s0, %s309_s15  }
  0x23   :  { %300 = dma.done.wait [#allocation3], 128  }
  0x24   :  { %301 = vsyncadd [#allocation3], 4294967168 }
  0x25   :  { %302 = dma.done.wait [#allocation6], 512  }
  0x26   :  { %303 = vsyncadd [#allocation6], 4294966784  ;;  %v310_v0 = vmov 0.0|0.0   ;;  %vm311_vm0 = vmmov 0   ;;  %v312_v1 = vmov 0.0   ;;  %v48_v2 = vld [vmem:[#allocation5] sm:$0xff] }
  0x27   :  { %218 = vmatprep.subr.bf16.mxu0 %v310_v0  ;;  %215 = vmatprep.mubr.msk.f32.mxu0 %vm311_vm0, %v312_v1  ;;  %v49_v3 = vld [vmem:[#allocation5 + $0x8] sm:$0xff]  ;;  %v50_v4 = vld [vmem:[#allocation5 + $0x10] sm:$0xff]  ;;  %v51_v6 = vld [vmem:[#allocation5 + $0x18] sm:$0xff]  ;;  %vm52_vm1 = vcmask 261120   ;;  %s313_s22 = smov [#allocation7]  }
  0x28   :  { %v219_v5 = vpack.c.bf16 %v49_v3, %v48_v2  ;;  %v222_v7 = vpack.c.bf16 %v51_v6, %v50_v4  ;;  %v47_v8 = vld [vmem:[#allocation2] sm:$0xff]  ;;  %s188_s23 = sshll.u32 %s313_s22, 4  ;;  %s189_s23 = int_to_ptr.vmem [resolvable:$true] %s188_s23 }
  0x29   :  { %v199_v9 = vld [vmem:[%s398_s2] ss:$0 sm:$0xff]  ;;  %s278_s24 = scalar_lea.vmem %s189_s23, 128  ;;  %p283_p3 = scmp.lt.s32.totalorder %s189_s23, %s189_s23 }
  0x2a   :  { %220 = vmatpush3.bf16.msra.mxu0 %v219_v5  ;;  %v200_v23 = vld [vmem:[%s399_s3] ss:$0 sm:$0xff]  ;;  %p279_p2 = scmp.ne.s32.totalorder %s189_s23, %s278_s24  ;;  %p284_p4 = scmp.lt.s32.totalorder %s278_s24, %s278_s24 }
  0x2b   :  { %221 = vmatprep.subr.bf16.mxu0 %v310_v0  ;;  %v201_v25 = vld [vmem:[%s400_s4] ss:$0 sm:$0xff] }
  0x2c   :  { %p285_p5 = por %p284_p4, %p283_p3 }
  0x2e   :  { %223 = vmatpush3.bf16.msra.mxu0 %v222_v7  ;;  %p286_p6 = pnand %p285_p5, %p279_p2 }
  0x31   :  { %216 = vmatmul.mubr.msk.f32.vlgmr.msra.gmra.mrb[0].mxu0 %vm52_vm1, %v47_v8 }
 0x104   :  { %v122_v10 = vpop.f32.mrb[0].mxu0 }
 0x105   :  { %v217_v11 = vpop.f32.mrb[1].mxu0  ;;  %v149_v12 = vadd.f32 %v199_v9, %v122_v10 }
 0x107   :  { %vm150_vm2 = vcmp.gt.f32.partialorder %v149_v12, 0.0  ;;  %v151_v13 = vmul.f32 0.01, %v149_v12 }
 0x109   :  { %v152_v14 = vsel %vm150_vm2, %v149_v12, %v151_v13 }
 0x10a   :  { %153 = vadd.xlane.f32.xlu0 %v152_v14 }
 0x197   :  { %v154_v15 = vpop.xlane.xlu0 %153 }
 0x198   :  { %v156_v16 = vmul.f32 0.0078125, %v154_v15 }
 0x19a   :  { %v157_v17 = vsub.f32 %v152_v14, %v156_v16 }
 0x19c   :  { %v158_v18 = vmul.f32 %v157_v17, %v157_v17 }
 0x19e   :  { %159 = vadd.xlane.f32.xlu0 %v158_v18 }
 0x22b   :  { %v160_v19 = vpop.xlane.xlu0 %159 }
 0x22c   :  { %v161_v20 = vmul.f32 0.0078125, %v160_v19 }
 0x22e   :  { %v162_v21 = vadd.f32 1e-05, %v161_v20 }
 0x230   :  { %232 = vrsqrt.f32 %v162_v21 }
 0x23a   :  { %v233_v22 = vpop.eup %232 }
 0x23b   :  { %v164_v24 = vmul.f32 %v233_v22, %v157_v17 }
 0x23d   :  { %v172_v26 = vmul.f32 %v200_v23, %v164_v24 }
 0x23f   :  { %v180_v27 = vadd.f32 %v201_v25, %v172_v26 }
 0x241   :  { %181 = vst [vmem:[#allocation7] sm:$0xff] %v180_v27 }
 0x242   :  { %289 = shalt.err (!%p286_p6)
}
 0x243   :  { %s290_s26 = scalar_lea.hbm %s401_s5, 128 }
 0x244   :  { %p291_p7 = scmp.ne.s32.totalorder %s401_s5, %s290_s26  ;;  %p294_p8 = scmp.lt.u32.totalorder %s290_s26, %s401_s5 }
 0x246   :  { %p296_p9 = pnand %p294_p8, %p291_p7 }
 0x248   :  { %299 = shalt.err (!%p296_p9)
}
 0x249   :  { %191 = dma.vmem_to_hbm [thread:$0]  %s189_s23, 128, %s401_s5, [#allocation4]  }
 0x24a   :  { %304 = dma.done.wait [#allocation4], 128  }
 0x24b   :  { %305 = vsyncadd [#allocation4], 4294967168 }
 0x24c   :  { %195 = vsyncpa [#allocation3], 1 }
 0x24d   :  { %196 = vsyncpa [#allocation6], 1 }
 0x24e   :  { %197 = vsyncpa [#allocation4], 1 }

</bundles_post_ra>
